<compile_context>
chip_gen: v6e
topology: v6e:2x2x1
jax: 0.10.0
libtpu: 0.0.40
codegen_flags: <defaults>
</compile_context>

<pallas_src>
import functools

import numpy as np
import jax
import jax.numpy as jnp
from jax.experimental import pallas as pl
from jax.experimental.pallas import tpu as pltpu

WEIGHT_REG = 1e-6
BIAS_REG = 1e-6
DROPOUT_REG = 1e-5
EPS = 1e-7
TEMP = 0.1


def _cd_linear_kernel(scalars_ref, x_ref, u_ref, wt_ref, b_ref, o_ref,
                      acc_ref, *, mxu_dtype):
    """Fused concrete-dropout mask + Linear (x_drop @ W.T + b) for one tile."""
    k = pl.program_id(2)

    @pl.when(k == 0)
    def _():
        acc_ref[...] = jnp.zeros_like(acc_ref)

    logit_p = scalars_ref[0]      # log(p+eps) - log(1-p+eps), grid constant (SMEM)
    inv_retain = scalars_ref[1]   # 1 / (1 - p), grid constant (SMEM)

    # Concrete-dropout retain mask:
    #   drop   = sigmoid((logit_p + logit_u) / T)
    #   retain = 1 - drop = sigmoid(-(logit_p + logit_u) / T)
    # -> one log + one sigmoid per element (vs 4 logs + sigmoid originally).
    u = u_ref[...]
    logit_u = jnp.log((u + EPS) / (1.0 - u + EPS))
    retain_mask = jax.nn.sigmoid(-(logit_p + logit_u) * (1.0 / TEMP))
    x_masked = x_ref[...] * retain_mask

    # Lane-native (K, N) RHS feeds the MXU directly; f32 accumulation always.
    acc_ref[...] += jnp.dot(x_masked.astype(mxu_dtype),
                            wt_ref[...].astype(mxu_dtype),
                            preferred_element_type=jnp.float32)

    @pl.when(k == pl.num_programs(2) - 1)
    def _():
        # Fold the 1/(1-p) rescale into the (smaller) output tile + bias add.
        o_ref[...] = (acc_ref[...] * inv_retain + b_ref[...]).astype(o_ref.dtype)


def _pick_tile(dim, candidates):
    """Largest candidate that evenly divides dim; full dim as a legal fallback."""
    for c in candidates:
        if dim % c == 0:
            return c
    return dim


def concrete_dropout_forward(p_logit, x, w, b, noise, *, mxu_dtype=jnp.float32):
    """Returns (out, regularization, p_numpy) like the PyTorch module forward.

    x: (B, D_in); w: (D_out, D_in) PyTorch Linear layout; b: (D_out,);
    noise: (B, D_in) uniform [0,1) (torch.rand_like equivalent).
    mxu_dtype: jnp.bfloat16 recommended on v6e/v7x, jnp.float32 on v5e / for
    bit-tight checks (elementwise math stays f32 either way).
    """
    B, D_in = x.shape
    D_out = w.shape[0]

    # ---- grid-constant scalar work hoisted out of the kernel -------------
    p = jax.nn.sigmoid(jnp.asarray(p_logit, jnp.float32).reshape(()))
    logit_p = jnp.log(p + EPS) - jnp.log(1.0 - p + EPS)
    inv_retain = 1.0 / (1.0 - p)
    scalars = jnp.stack([logit_p, inv_retain]).astype(jnp.float32)   # (2,) -> SMEM

    # ---- regularizer: independent of x / batch -> plain JAX (XLA fuses) --
    # NOTE: log(p) / log(1-p) without EPS matches the PyTorch module exactly.
    reg = (WEIGHT_REG * jnp.sum(w * w) * inv_retain
           + BIAS_REG * jnp.sum(b * b)
           + (p * jnp.log(p) + (1.0 - p) * jnp.log(1.0 - p))
           * (DROPOUT_REG * D_in))

    # ---- tiling: lane-dense last dims (multiples of 128) where possible --
    tm = _pick_tile(B, (512, 256, 128, 64, 32, 16, 8))
    tn = _pick_tile(D_out, (256, 128))
    tk = _pick_tile(D_in, (512, 256, 128))
    grid = (B // tm, D_out // tn, D_in // tk)

    wt = w.T                      # (D_in, D_out): MXU-native (K, N) layout
    b2 = b.reshape(1, D_out)

    out = pl.pallas_call(
        functools.partial(_cd_linear_kernel, mxu_dtype=mxu_dtype),
        out_shape=jax.ShapeDtypeStruct((B, D_out), jnp.float32),
        grid=grid,
        in_specs=[
            pl.BlockSpec(memory_space=pltpu.MemorySpace.SMEM),       # p scalars
            pl.BlockSpec((tm, tk), lambda i, j, k: (i, k)),          # x
            pl.BlockSpec((tm, tk), lambda i, j, k: (i, k)),          # noise
            pl.BlockSpec((tk, tn), lambda i, j, k: (k, j)),          # w.T
            pl.BlockSpec((1, tn), lambda i, j, k: (0, j)),           # bias
        ],
        out_specs=pl.BlockSpec((tm, tn), lambda i, j, k: (i, j)),
        scratch_shapes=[pltpu.VMEM((tm, tn), jnp.float32)],
        compiler_params=pltpu.CompilerParams(
            dimension_semantics=("parallel", "parallel", "arbitrary")),
    )(scalars, x, noise, wt, b2)

    return out, reg.reshape(1), np.asarray(p)


def reference(p_logit, x, w, b, noise):
    """Pure-JAX transliteration of the PyTorch forward (literal formulas)."""
    p = jax.nn.sigmoid(p_logit)                       # (1,)
    drop_prob = (jnp.log(p + EPS) - jnp.log(1.0 - p + EPS)
                 + jnp.log(noise + EPS) - jnp.log(1.0 - noise + EPS))
    drop_prob = jax.nn.sigmoid(drop_prob / TEMP)
    x_drop = (x * (1.0 - drop_prob)) / (1.0 - p)
    out = x_drop @ w.T + b
    reg = (WEIGHT_REG * jnp.sum(w ** 2) / (1.0 - p)
           + BIAS_REG * jnp.sum(b ** 2)
           + (p * jnp.log(p) + (1.0 - p) * jnp.log(1.0 - p))
           * DROPOUT_REG * x.shape[-1])
    return out, reg


if __name__ == "__main__":
    key = jax.random.PRNGKey(0)
    kx, kw, kb, kn = jax.random.split(key, 4)

    # D_in = 384 -> tk = 128 (3-step K accumulation); D_out = 128 -> lane-dense
    # output tile; B = 8 -> sublane-aligned M tile.  Still tiny / fast.
    B, D_in, D_out = 8, 384, 128
    x = jax.random.normal(kx, (B, D_in), dtype=jnp.float32)
    # Deterministic synthetic Linear(D_in -> D_out) params, PyTorch layout.
    w = jax.random.normal(kw, (D_out, D_in), dtype=jnp.float32) * 0.1
    b = jax.random.normal(kb, (D_out,), dtype=jnp.float32) * 0.1
    # torch.rand_like(x) equivalent (fed to the kernel for determinism).
    noise = jax.random.uniform(kn, (B, D_in), dtype=jnp.float32)

    # p_logit init: uniform(init_min, init_max) with init_min == init_max == 0.2
    # is deterministically logit(0.2).
    init_p = 0.2
    p_logit = jnp.array([np.log(init_p) - np.log(1.0 - init_p)], dtype=jnp.float32)

    ref_out, ref_reg = reference(p_logit, x, w, b, noise)

    # --- f32 MXU path: strict check against the literal PyTorch semantics ---
    out, reg, p_np = concrete_dropout_forward(p_logit, x, w, b, noise,
                                              mxu_dtype=jnp.float32)
    jax.block_until_ready((out, reg))
    assert np.allclose(np.asarray(out), np.asarray(ref_out), rtol=1e-3, atol=1e-3)
    assert np.allclose(np.asarray(reg), np.asarray(ref_reg), rtol=1e-3, atol=1e-3)
    assert np.allclose(p_np, np.asarray(jax.nn.sigmoid(p_logit)), rtol=1e-6, atol=1e-6)

    # --- bf16 MXU inputs (recommended on v6e/v7x), f32 accumulation retained ---
    out_bf16, _, _ = concrete_dropout_forward(p_logit, x, w, b, noise,
                                              mxu_dtype=jnp.bfloat16)
    jax.block_until_ready(out_bf16)
    assert np.allclose(np.asarray(out_bf16), np.asarray(ref_out),
                       rtol=2e-2, atol=2e-2)

    print("KERNEL_OK")
</pallas_src>

<mosaic_0001>
module attributes {stable_mosaic.version = 11 : i64} {
  func.func @_cd_linear_kernel(%arg0: i32, %arg1: i32, %arg2: i32, %arg3: memref<2xf32, #tpu.memory_space<smem>>, %arg4: memref<8x128xf32, #tpu.memory_space<vmem>>, %arg5: memref<8x128xf32, #tpu.memory_space<vmem>>, %arg6: memref<128x128xf32, #tpu.memory_space<vmem>>, %arg7: memref<1x128xf32, #tpu.memory_space<vmem>>, %arg8: memref<8x128xf32, #tpu.memory_space<vmem>>, %arg9: memref<8x128xf32, #tpu.memory_space<vmem>>) attributes {dimension_semantics = [#tpu.dimension_semantics<parallel>, #tpu.dimension_semantics<parallel>, #tpu.dimension_semantics<arbitrary>], iteration_bounds = array<i64: 1, 1, 3>, scalar_prefetch = 0 : i64, scratch_operands = 1 : i64, tpu.core_type = #tpu.core_type<tc>, window_params = [{transform_indices = @transform_0, window_bounds = array<i64: 2>}, {transform_indices = @transform_1, window_bounds = array<i64: 8, 128>}, {transform_indices = @transform_2, window_bounds = array<i64: 8, 128>}, {transform_indices = @transform_3, window_bounds = array<i64: 128, 128>}, {transform_indices = @transform_4, window_bounds = array<i64: 1, 128>}, {transform_indices = @transform_5, window_bounds = array<i64: 8, 128>}]} {
    %c0_i32 = arith.constant 0 : i32
    %0 = arith.cmpi eq, %arg2, %c0_i32 : i32
    %1 = arith.extui %0 : i1 to i32
    %c0_i32_0 = arith.constant 0 : i32
    %2 = arith.cmpi ne, %1, %c0_i32_0 : i32
    scf.if %2 {
      %cst_18 = arith.constant 0.000000e+00 : f32
      %35 = vector.broadcast %cst_18 : f32 to vector<8x128xf32>
      %c0_19 = arith.constant 0 : index
      %c0_20 = arith.constant 0 : index
      %36 = vector.load %arg9[%c0_19, %c0_20] : memref<8x128xf32, #tpu.memory_space<vmem>>, vector<8x128xf32>
      tpu.vector_store %arg9[%c0_19, %c0_20], %35 {strides = array<i32>} : memref<8x128xf32, #tpu.memory_space<vmem>>, vector<8x128xf32>,
    } else {
    }
    %c0 = arith.constant 0 : index
    %3 = memref.load %arg3[%c0] : memref<2xf32, #tpu.memory_space<smem>>
    %c1 = arith.constant 1 : index
    %4 = memref.load %arg3[%c1] : memref<2xf32, #tpu.memory_space<smem>>
    %c0_1 = arith.constant 0 : index
    %c0_2 = arith.constant 0 : index
    %5 = vector.load %arg5[%c0_1, %c0_2] : memref<8x128xf32, #tpu.memory_space<vmem>>, vector<8x128xf32>
    %cst = arith.constant 1.000000e-07 : f32
    %6 = vector.broadcast %cst : f32 to vector<8x128xf32>
    %7 = arith.addf %5, %6 : vector<8x128xf32>
    %cst_3 = arith.constant 1.000000e+00 : f32
    %8 = vector.broadcast %cst_3 : f32 to vector<8x128xf32>
    %9 = arith.subf %8, %5 : vector<8x128xf32>
    %cst_4 = arith.constant 1.000000e-07 : f32
    %10 = vector.broadcast %cst_4 : f32 to vector<8x128xf32>
    %11 = arith.addf %9, %10 : vector<8x128xf32>
    %12 = arith.divf %7, %11 : vector<8x128xf32>
    %13 = math.log %12 : vector<8x128xf32>
    %14 = vector.broadcast %3 : f32 to vector<8x128xf32>
    %15 = arith.addf %14, %13 : vector<8x128xf32>
    %cst_5 = arith.constant 0.000000e+00 : f32
    %16 = vector.broadcast %cst_5 : f32 to vector<8x128xf32>
    %17 = arith.subf %16, %15 : vector<8x128xf32>
    %cst_6 = arith.constant 1.000000e+01 : f32
    %18 = vector.broadcast %cst_6 : f32 to vector<8x128xf32>
    %19 = arith.mulf %17, %18 : vector<8x128xf32>
    %20 = arith.negf %19 : vector<8x128xf32>
    %21 = math.exp %20 : vector<8x128xf32>
    %cst_7 = arith.constant 1.000000e+00 : f32
    %22 = vector.broadcast %cst_7 : f32 to vector<8x128xf32>
    %23 = arith.addf %22, %21 : vector<8x128xf32>
    %24 = arith.divf %22, %23 : vector<8x128xf32>
    %c0_8 = arith.constant 0 : index
    %c0_9 = arith.constant 0 : index
    %25 = vector.load %arg4[%c0_8, %c0_9] : memref<8x128xf32, #tpu.memory_space<vmem>>, vector<8x128xf32>
    %26 = arith.mulf %25, %24 : vector<8x128xf32>
    %c0_10 = arith.constant 0 : index
    %c0_11 = arith.constant 0 : index
    %27 = vector.load %arg9[%c0_10, %c0_11] : memref<8x128xf32, #tpu.memory_space<vmem>>, vector<8x128xf32>
    %c0_12 = arith.constant 0 : index
    %c0_13 = arith.constant 0 : index
    %28 = vector.load %arg6[%c0_12, %c0_13] : memref<128x128xf32, #tpu.memory_space<vmem>>, vector<128x128xf32>
    %cst_14 = arith.constant dense<0.000000e+00> : vector<8x128xf32>
    %29 = tpu.matmul %26, %28, %cst_14 {dimension_numbers = #tpu.dot_dimension_numbers<[1], [0], [0], [1], [0, 0, 1, 1], [], []>} : vector<8x128xf32>, vector<128x128xf32>, vector<8x128xf32> -> vector<8x128xf32>
    %30 = arith.addf %27, %29 : vector<8x128xf32>
    %c0_15 = arith.constant 0 : index
    %c0_16 = arith.constant 0 : index
    %31 = vector.load %arg9[%c0_15, %c0_16] : memref<8x128xf32, #tpu.memory_space<vmem>>, vector<8x128xf32>
    tpu.vector_store %arg9[%c0_15, %c0_16], %30 {strides = array<i32>} : memref<8x128xf32, #tpu.memory_space<vmem>>, vector<8x128xf32>,
    %c2_i32 = arith.constant 2 : i32
    %32 = arith.cmpi eq, %arg2, %c2_i32 : i32
    %33 = arith.extui %32 : i1 to i32
    %c0_i32_17 = arith.constant 0 : i32
    %34 = arith.cmpi ne, %33, %c0_i32_17 : i32
    scf.if %34 {
      %c0_18 = arith.constant 0 : index
      %c0_19 = arith.constant 0 : index
      %35 = vector.load %arg9[%c0_18, %c0_19] : memref<8x128xf32, #tpu.memory_space<vmem>>, vector<8x128xf32>
      %36 = vector.broadcast %4 : f32 to vector<8x128xf32>
      %37 = arith.mulf %35, %36 : vector<8x128xf32>
      %c0_20 = arith.constant 0 : index
      %c0_21 = arith.constant 0 : index
      %38 = vector.load %arg7[%c0_20, %c0_21] : memref<1x128xf32, #tpu.memory_space<vmem>>, vector<1x128xf32>
      %39 = vector.broadcast %38 : vector<1x128xf32> to vector<8x128xf32>
      %40 = arith.addf %37, %39 : vector<8x128xf32>
      %c0_22 = arith.constant 0 : index
      %c0_23 = arith.constant 0 : index
      %41 = vector.load %arg8[%c0_22, %c0_23] : memref<8x128xf32, #tpu.memory_space<vmem>>, vector<8x128xf32>
      tpu.vector_store %arg8[%c0_22, %c0_23], %40 {strides = array<i32>} : memref<8x128xf32, #tpu.memory_space<vmem>>, vector<8x128xf32>,
    } else {
    }
    return
  }
  func.func @transform_0(%arg0: i32, %arg1: i32, %arg2: i32) -> i32 {
    %c0_i32 = arith.constant 0 : i32
    %c0_i32_0 = arith.constant 0 : i32
    return %c0_i32 : i32
  }
  func.func @transform_1(%arg0: i32, %arg1: i32, %arg2: i32) -> (i32, i32) {
    %c0_i32 = arith.constant 0 : i32
    return %arg0, %arg2 : i32, i32
  }
  func.func @transform_2(%arg0: i32, %arg1: i32, %arg2: i32) -> (i32, i32) {
    %c0_i32 = arith.constant 0 : i32
    return %arg0, %arg2 : i32, i32
  }
  func.func @transform_3(%arg0: i32, %arg1: i32, %arg2: i32) -> (i32, i32) {
    %c0_i32 = arith.constant 0 : i32
    return %arg2, %arg1 : i32, i32
  }
  func.func @transform_4(%arg0: i32, %arg1: i32, %arg2: i32) -> (i32, i32) {
    %c0_i32 = arith.constant 0 : i32
    %c0_i32_0 = arith.constant 0 : i32
    return %c0_i32, %arg1 : i32, i32
  }
  func.func @transform_5(%arg0: i32, %arg1: i32, %arg2: i32) -> (i32, i32) {
    %c0_i32 = arith.constant 0 : i32
    return %arg0, %arg1 : i32, i32
  }
}

</mosaic_0001>

<bundles_post_ra>
// kernel: tpu_custom_call.1
= control target key start
LH: loop header
LB: loop body
LE: loop exit
PB: predicated region body
PF: predicated region fallthrough
CT: control target
= control target key end

     0   :  { %s1250_s0 = inlined_call_operand.hbm [shape: f32[2], index: 0, kind: input, shape index: {}]   ;;  %s1251_s1 = inlined_call_operand.hbm [shape: f32[8,384], index: 1, kind: input, shape index: {}]   ;;  %s1252_s2 = inlined_call_operand.hbm [shape: f32[8,384], index: 2, kind: input, shape index: {}]   ;;  %s1253_s3 = inlined_call_operand.hbm [shape: f32[384,128], index: 3, kind: input, shape index: {}]   ;;  %s1254_s4 = inlined_call_operand.vmem [shape: f32[1,128], index: 4, kind: input, shape index: {}]   ;;  %s1255_s5 = inlined_call_operand.hbm [shape: f32[8,128], index: 5, kind: output, shape index: {}]  }
   0x1   :  { %1256 = sst [smem:[#allocation16_spill]] %s1251_s1 }
   0x2   :  { %1257 = sst [smem:[#allocation17_spill]] %s1252_s2 }
   0x3   :  { %10 = vsyncpa [#allocation6], 0 }
   0x4   :  { %11 = vsyncpa [#allocation4], 0 }
   0x5   :  { %13 = vsyncpa [#allocation4 + $0x1], 0 }
   0x6   :  { %14 = vsyncpa [#allocation9], 0 }
   0x7   :  { %16 = vsyncpa [#allocation9 + $0x1], 0 }
   0x8   :  { %17 = vsyncpa [#allocation5], 0  ;;  %s1044_s18 = smov 0   ;;  %s1046_s19 = smov 0  }
   0x9   :  { %s1048_s20 = smov 0   ;;  %s1050_s21 = smov 0  }
   0xa   :  { %s1052_s22 = smov 0   ;;  %s1054_s23 = smov 0  }
   0xb LB: > { %s35_s24 = sadd.s32 1, %s998_s22  ;;  %s72_s25 = sadd.s32 1, %s990_s20  ;;  %s1002_s23 = sphi %s1054_s23, %s23_s23   ;;  %s998_s22 = sphi %s1052_s22, %s1268_s22   ;;  %s994_s21 = sphi %s1050_s21, %s1267_s21   ;;  %s990_s20 = sphi %s1048_s20, %s1266_s20   ;;  %s986_s19 = sphi %s1046_s19, %s1265_s19   ;;  %s982_s18 = sphi %s1044_s18, %s1264_s18  }
   0xc   : > { %p36_p0 = scmp.ge.s32.totalorder %s35_s24, 3  ;;  %p79_p1 = scmp.ne.s32.totalorder %s990_s20, %s986_s19 }
   0xd   : > { %p80_p2 = scmp.eq.s32.totalorder %s1002_s23, 0  ;;  %p754_p4 = scmp.lt.s32.totalorder %s1002_s23, 3 }
   0xe   : > { %s1270_s24 = smov (%p36_p0, %s35_s24), 0  ;;  %s1085_s27 = sand.u32 1, %s990_s20  }
   0xf   : > { %p81_p3 = por %p80_p2, %p79_p1  ;;  %s68_s26 = ssub.s32 %s998_s22, %s1270_s24 }
  0x10   : > { %p70_p5 = scmp.eq.s32.totalorder %s68_s26, 0  ;;  %s651_s28 = sshll.u32 %s1085_s27, 3 }
  0x11   : > { %s652_s29 = sshll.u32 %s998_s22, 7  ;;  %p1089_p6 = pnand %p754_p4, %p81_p3 }
  0x12   : > { %s1094_s6 = scalar_select %p70_p5, %s990_s20, %s72_s25  }
  0x13   : > { %s254_s7 = sand.u32 1, %s1002_s23   ;;  %s1259_s2 = sld [smem:[#allocation17_spill]] }
  0x14   : > { %s258_s11 = scalar_lea.vmem [#allocation8], %s651_s28  ;;  %s655_s13 = sshll.u32 %s1085_s27, 7 }
  0x15   : > { %s267_s12 = sshll.u32 %s258_s11, 4  ;;  %s1105_s14 = scalar_lea.sflag [#allocation9], %s254_s7  ;;  %s268_s12 = int_to_ptr.vmem [resolvable:$true] %s267_s12 }
  0x16   : > { %p823_p7 = pneg %p1089_p6  ;;  %s834_s15 = scalar_lea.vmem %s268_s12, 128 }
  0x17   : > { %p835_p8 = scmp.ne.s32.totalorder %s268_s12, %s834_s15  ;;  %s1004_s16 = smov [#allocation8]  }
  0x18   : > { %s839_s17 = sshll.u32 %s1004_s16, 4  ;;  %s840_s17 = int_to_ptr.vmem [resolvable:$false] %s839_s17 }
  0x19   : > { %s265_s10 = scalar_lea.hbm %s1259_s2, %s652_s29  ;;  %p837_p9 = pnand %p835_p8, %p823_p7 }
  0x1a   : > { %s841_s25 = scalar_lea.vmem %s840_s17, 256  ;;  %p842_p11 = scmp.lt.s32.totalorder %s268_s12, %s840_s17 }
  0x1b   : > { %p838_p10 = pneg %p837_p9  ;;  %p843_p12 = scmp.lt.s32.totalorder %s841_s25, %s834_s15 }
  0x1d   : > { %p844_p13 = por %p843_p12, %p842_p11 }
  0x1f   : > { %p845_p0 = pnand %p844_p13, %p838_p10 }
  0x21   : > { %848 = shalt.err (!%p845_p0)
}
  0x22   : > { %749 = dma.hbm_to_vmem [thread:$0]  (!%p1089_p6), %s265_s10, 128, %s268_s12, %s1105_s14  }
  0x23   : > { %s278_s26 = scalar_lea.vmem [#allocation10], %s655_s13  ;;  %s1118_s8 = sadd.s32 4294967295, %s1002_s23  }
  0x24   : > { %s286_s7 = sshll.u32 %s278_s26, 4  ;;  %p85_p1 = scmp.ne.s32.totalorder %s986_s19, %s982_s18  ;;  %s1115_s7 = int_to_ptr.vmem [resolvable:$true] %s286_s7 }
  0x25   : > { %p86_p2 = scmp.eq.s32.totalorder %s1118_s8, 0  ;;  %p647_p3 = scmp.ge.s32.totalorder %s1002_s23, 1 }
  0x26   : > { %p206_p4 = scmp.lt.s32.totalorder %s1002_s23, 4  ;;  %s1262_s1 = sld [smem:[#allocation16_spill]] }
  0x27   : > { %p1127_p5 = por %p86_p2, %p85_p1  ;;  %s238_s13 = scalar_lea.vmem [#allocation7], %s651_s28 }
  0x28   : > { %p1131_p8 = pnand %p647_p3, %p206_p4  ;;  %s247_s15 = sshll.u32 %s238_s13, 4  ;;  %s248_s15 = int_to_ptr.vmem [resolvable:$true] %s247_s15 }
  0x29   : > { %s672_s16 = sshll.u32 %s998_s22, 11  ;;  %s235_s25 = scalar_lea.sflag [#allocation4], %s1085_s27 }
  0x2a   : > { %p739_p9 = pneg %p1131_p8  ;;  %s862_s26 = scalar_lea.vmem %s248_s15, 128 }
  0x2b   : > { %p863_p11 = scmp.ne.s32.totalorder %s248_s15, %s862_s26  ;;  %s1005_s2 = smov [#allocation7]  }
  0x2c   : > { %s245_s18 = scalar_lea.hbm %s1262_s1, %s652_s29  ;;  %p1147_p10 = pnand %p739_p9, %p86_p2 }
  0x2d   : > { %p865_p12 = pnand %p863_p11, %p823_p7  ;;  %s867_s11 = sshll.u32 %s1005_s2, 4  ;;  %s868_s11 = int_to_ptr.vmem [resolvable:$false] %s867_s11 }
  0x2e   : > { %s869_s29 = scalar_lea.vmem %s868_s11, 256  ;;  %p870_p0 = scmp.lt.s32.totalorder %s248_s15, %s868_s11 }
  0x2f   : > { %p866_p13 = pneg %p865_p12  ;;  %p871_p1 = scmp.lt.s32.totalorder %s869_s29, %s862_s26 }
  0x31   : > { %p872_p3 = por %p871_p1, %p870_p0 }
  0x33   : > { %p873_p4 = pnand %p872_p3, %p866_p13 }
  0x35   : > { %876 = shalt.err (!%p873_p4)
}
  0x36   : > { %746 = dma.hbm_to_vmem [thread:$0]  (!%p1089_p6), %s245_s18, 128, %s248_s15, %s235_s25  }
  0x37   : > { %s285_s12 = scalar_lea.hbm %s1253_s3, %s672_s16  ;;  %s1006_s2 = smov [#allocation3]  }
  0x38   : > { %742 = dma.hbm_to_smem (!%p1147_p10), %s1250_s0, 16, %s1006_s2, [#allocation6]  }
  0x39   : > { %s901_s26 = scalar_lea.vmem %s1115_s7, 2048  ;;  %s1007_s29 = smov [#allocation10]  }
  0x3a   : > { %p902_p9 = scmp.ne.s32.totalorder %s1115_s7, %s901_s26  ;;  %s906_s1 = sshll.u32 %s1007_s29, 4  ;;  %s907_s1 = int_to_ptr.vmem [resolvable:$false] %s906_s1 }
  0x3b   : > { %s908_s18 = scalar_lea.vmem %s907_s1, 4096  ;;  %p909_p13 = scmp.lt.s32.totalorder %s1115_s7, %s907_s1 }
  0x3c   : > { %p904_p11 = pnand %p902_p9, %p823_p7  ;;  %p910_p0 = scmp.lt.s32.totalorder %s908_s18, %s901_s26 }
  0x3e   : > { %p905_p12 = pneg %p904_p11  ;;  %p911_p1 = por %p910_p0, %p909_p13 }
  0x40   : > { %p912_p3 = pnand %p911_p1, %p905_p12 }
  0x42   : > { %915 = shalt.err (!%p912_p3)
}
  0x43   : > { %s1008_s15 = smov 128   ;;  %s1009_s16 = smov 8  }
  0x44   : > { %752 = dma.hbm_to_vmem [thread:$0]  (!%p1089_p6), %s285_s12, 2048, %s1115_s7, %s1105_s14, %s1008_s15, %s1008_s15, %s1009_s16  }
  0x45   : > { %298 = sbr.rel (%p1131_p8) target bundleno = 395 (0x18b), region = 40 }
  0x4a   : > { %965 = dma.done.wait (%p86_p2), [#allocation6], 16  }
  0x4b   : > { %967 = vsyncadd (%p86_p2), [#allocation6], 4294967280  ;;  %s304_s1 = sand.u32 1, %s986_s19  }
  0x4c   : > { %s660_s17 = sshll.u32 %s304_s1, 3  ;;  %s305_s25 = scalar_lea.sflag [#allocation4], %s304_s1 }
  0x4d   : > { %s1182_s27 = scalar_lea.vmem [#allocation7], %s660_s17 }
  0x4e   : > { %969 = dma.done.wait (%p1127_p5), %s305_s25, 128  }
  0x4f   : > { %971 = vsyncadd (%p1127_p5), %s305_s25, 4294967168  ;;  %s313_s30 = sand.u32 1, %s1118_s8   ;;  %s317_s7 = scalar_lea.vmem [#allocation8], %s660_s17 }
  0x50   : > { %s314_s14 = scalar_lea.sflag [#allocation9], %s313_s30 }
  0x51   : > { %973 = dma.done.wait (%p1127_p5), %s314_s14, 2176  }
  0x52   : > { %975 = vsyncadd (%p1127_p5), %s314_s14, 4294965120  ;;  %s662_s10 = sshll.u32 %s304_s1, 7 }
  0x53   : > { %s1193_s28 = scalar_lea.vmem [#allocation10], %s662_s10 }
  0x54   : > { %331 = sfence }
  0x55   : > { %p663_p6 = scmp.ne.s32.totalorder %s994_s21, 0 }
  0x57   : > { %369 = sbr.rel (%p663_p6) target bundleno = 94 (0x5e), region = 60 }
  0x5c   : > { %v1010_v0 = vmov 0.0  }
  0x5d   : > { %370 = vst [vmem:[#allocation2] sm:$0xff] %v1010_v0 }
  0x5e PF: > { %s1196_s12 = sld [smem:[#allocation3 + $0x1]]  ;;  %v409_v1 = vld [vmem:[%s1193_s28 + $0x78] sm:$0xff]  ;;  %v1011_v2 = vmov 0.0   ;;  %v408_v3 = vld [vmem:[%s1193_s28 + $0x70] sm:$0xff]  ;;  %vm1012_vm0 = vmmov 0   ;;  %v407_v4 = vld [vmem:[%s1193_s28 + $0x68] sm:$0xff] }
  0x5f   : > { %690 = vmatprep.subr.mxu0 %v1011_v2  ;;  %722 = vmatprep.mubr.msk.f32.mxu0 %vm1012_vm0, %v1011_v2  ;;  %v406_v5 = vld [vmem:[%s1193_s28 + $0x60] sm:$0xff]  ;;  %v373_v6 = vld [vmem:[%s317_s7] sm:$0xff]  ;;  %v403_v11 = vld [vmem:[%s1193_s28 + $0x48] sm:$0xff]  ;;  %s371_s9 = sld [smem:[#allocation3]]  ;;  %p666_p7 = scmp.ne.s32.totalorder %s994_s21, 2 }
  0x60   : > { %691 = vmatpush3.msra.mxu0 %v409_v1  ;;  %v375_v7 = vsub.f32 1.0, %v373_v6  ;;  %v405_v8 = vld [vmem:[%s1193_s28 + $0x58] sm:$0xff]  ;;  %v404_v10 = vld [vmem:[%s1193_s28 + $0x50] sm:$0xff]  ;;  %v402_v12 = vld [vmem:[%s1193_s28 + $0x40] sm:$0xff]  ;;  %v374_v16 = vadd.f32 1e-07, %v373_v6 }
  0x61   : > { %692 = vmatprep.subr.mxu0 %v1011_v2  ;;  %v401_v13 = vld [vmem:[%s1193_s28 + $0x38] sm:$0xff]  ;;  %v400_v14 = vld [vmem:[%s1193_s28 + $0x30] sm:$0xff]  ;;  %v399_v15 = vld [vmem:[%s1193_s28 + $0x28] sm:$0xff] }
  0x62   : > { %693 = vmatpush3.msra.mxu0 %v408_v3  ;;  %v376_v9 = vadd.f32 1e-07, %v375_v7  ;;  %v398_v17 = vld [vmem:[%s1193_s28 + $0x20] sm:$0xff]  ;;  %v397_v19 = vld [vmem:[%s1193_s28 + $0x18] sm:$0xff]  ;;  %v396_v21 = vld [vmem:[%s1193_s28 + $0x10] sm:$0xff] }
  0x63   : > { %694 = vmatprep.subr.mxu0 %v1011_v2  ;;  %v395_v22 = vld [vmem:[%s1193_s28 + $0x8] sm:$0xff]  ;;  %v394_v23 = vld [vmem:[%s1193_s28] sm:$0xff] }
  0x64   : > { %695 = vmatpush3.msra.mxu0 %v407_v4  ;;  %813 = vrcp.f32 %v376_v9  ;;  %v391_v33 = vld [vmem:[%s1182_s27] sm:$0xff]  ;;  %v393_v36 = vld [vmem:[#allocation2] sm:$0xff] }
  0x65   : > { %696 = vmatprep.subr.mxu0 %v1011_v2  ;;  %v381_v25 = vstv %s371_s9 }
  0x66   : > { %697 = vmatpush3.msra.mxu0 %v406_v5 }
  0x67   : > { %698 = vmatprep.subr.mxu0 %v1011_v2 }
  0x68   : > { %699 = vmatpush3.msra.mxu0 %v405_v8 }
  0x69   : > { %700 = vmatprep.subr.mxu0 %v1011_v2 }
  0x6a   : > { %701 = vmatpush3.msra.mxu0 %v404_v10 }
  0x6b   : > { %702 = vmatprep.subr.mxu0 %v1011_v2 }
  0x6c   : > { %703 = vmatpush3.msra.mxu0 %v403_v11 }
  0x6d   : > { %704 = vmatprep.subr.mxu0 %v1011_v2 }
  0x6e   : > { %705 = vmatpush3.msra.mxu0 %v402_v12 }
  0x6f   : > { %706 = vmatprep.subr.mxu0 %v1011_v2 }
  0x70   : > { %707 = vmatpush3.msra.mxu0 %v401_v13 }
  0x71   : > { %708 = vmatprep.subr.mxu0 %v1011_v2  ;;  %v814_v18 = vpop.eup %813 }
  0x72   : > { %709 = vmatpush3.msra.mxu0 %v400_v14  ;;  %v378_v20 = vmul.f32 %v814_v18, %v374_v16 }
  0x73   : > { %710 = vmatprep.subr.mxu0 %v1011_v2 }
  0x74   : > { %711 = vmatpush3.msra.mxu0 %v399_v15  ;;  %815 = vlog2.f32 %v378_v20 }
  0x75   : > { %712 = vmatprep.subr.mxu0 %v1011_v2 }
  0x76   : > { %713 = vmatpush3.msra.mxu0 %v398_v17 }
  0x77   : > { %714 = vmatprep.subr.mxu0 %v1011_v2 }
  0x78   : > { %715 = vmatpush3.msra.mxu0 %v397_v19 }
  0x79   : > { %716 = vmatprep.subr.mxu0 %v1011_v2 }
  0x7a   : > { %717 = vmatpush3.msra.mxu0 %v396_v21 }
  0x7b   : > { %718 = vmatprep.subr.mxu0 %v1011_v2 }
  0x7c   : > { %719 = vmatpush3.msra.mxu0 %v395_v22 }
  0x7d   : > { %720 = vmatprep.subr.mxu0 %v1011_v2 }
  0x7e   : > { %721 = vmatpush3.msra.mxu0 %v394_v23 }
  0x81   : > { %v816_v24 = vpop.eup %815 }
  0x82   : > { %v380_v26 = vmul.f32 0.6931472, %v816_v24 }
  0x84   : > { %v382_v27 = vadd.f32 %v381_v25, %v380_v26 }
  0x86   : > { %v383_v28 = vsub.f32 0.0, %v382_v27 }
  0x88   : > { %v665_v29 = vmul.f32 -10.0, %v383_v28 }
  0x8a   : > { %v386_v30 = vmul.f32 1.442695, %v665_v29 }
  0x8c   : > { %817 = vpow2.f32 %v386_v30 }
  0x99   : > { %v818_v31 = vpop.eup %817 }
  0x9a   : > { %v388_v32 = vadd.f32 1.0, %v818_v31 }
  0x9c   : > { %819 = vrcp.f32 %v388_v32 }
  0xa9   : > { %v820_v34 = vpop.eup %819 }
  0xaa   : > { %v392_v35 = vmul.f32 %v820_v34, %v391_v33 }
  0xac   : > { %723 = vmatmul.mubr.f32.vlgmr.msra.gmra.mxu0 %v392_v35 }
 0x16b   : > { %485 = sbr.rel (%p666_p7) target bundleno = 380 (0x17c), region = 64 }
 0x16c   : > { %v476_v37 = vpop.f32.mrf.mxu0 }
 0x16d   : > { %v480_v38 = vadd.f32 %v476_v37, %v393_v36 }
 0x16e   : > { %v724_v39 = vpop.f32.mrf.mxu0 }
 0x16f   : > { %481 = vst [vmem:[#allocation2] sm:$0xff] %v480_v38 }
 0x170   : > { %v487_v41 = vstv %s1196_s12  ;;  %v667_v42 = vld [vmem:[%s1254_s4] ss:$0 sm:$0xff] }
 0x176   : > { %v486_v40 = vld [vmem:[#allocation2] sm:$0xff] }
 0x177   : > { %v488_v43 = vmul.f32 %v487_v41, %v486_v40 }
 0x179   : > { %v496_v44 = vadd.f32 %v667_v42, %v488_v43 }
 0x17b   : > { %497 = vst [vmem:[#allocation11] sm:$0xff] %v496_v44 }
 0x17c PF: > { %p756_p2 = scmp.eq.s32.totalorder %s1118_s8, 2  ;;  %s1013_s11 = smov [#allocation11]  }
 0x17d   : > { %s508_s26 = sshll.u32 %s1013_s11, 4  ;;  %s509_s26 = int_to_ptr.vmem [resolvable:$true] %s508_s26 }
 0x17e   : > { %s916_s29 = scalar_lea.vmem %s509_s26, 128  ;;  %p923_p4 = scmp.lt.s32.totalorder %s509_s26, %s509_s26 }
 0x17f   : > { %p917_p5 = scmp.ne.s32.totalorder %s509_s26, %s916_s29  ;;  %p924_p9 = scmp.lt.s32.totalorder %s916_s29, %s916_s29 }
 0x181   : > { %p918_p8 = pnand %p917_p5, %p756_p2  ;;  %p925_p11 = por %p924_p9, %p923_p4 }
 0x183   : > { %p919_p10 = pneg %p918_p8 }
 0x185   : > { %p926_p12 = pnand %p925_p11, %p919_p10 }
 0x187   : > { %929 = shalt.err (!%p926_p12)
}
 0x188   : > { %736 = dma.vmem_to_hbm [thread:$0]  (%p756_p2), %s509_s26, 128, %s1255_s5, [#allocation5]  }
 0x189   : > { %977 = dma.done.wait (%p756_p2), [#allocation5], 128  }
 0x18a   : > { %979 = vsyncadd (%p756_p2), [#allocation5], 4294967168 }
 0x18b PF: > { %s23_s23 = sadd.s32 1, %s1002_s23   ;;  %s1264_s18 = smov %s986_s19 }
 0x18c   : > { %p20_p13 = scmp.ge.s32.totalorder %s23_s23, 5   ;;  %s1265_s19 = smov %s990_s20 }
 0x18d   : > { %s1266_s20 = smov %s1094_s6  ;;  %s1267_s21 = smov %s998_s22 }
 0x18e   : > { %s1268_s22 = smov %s1270_s24  ;;  %22 = sbr.rel (!%p20_p13) target bundleno = 11 (0xb), region = 118 }
 0x193   :  { %521 = vsyncpa [#allocation4], 1 }
 0x194   :  { %523 = vsyncpa [#allocation4 + $0x1], 1 }
 0x195   :  { %524 = vsyncpa [#allocation9], 1 }
 0x196   :  { %526 = vsyncpa [#allocation9 + $0x1], 1 }
 0x197   :  { %527 = vsyncpa [#allocation5], 1 }
 0x198   :  { %529 = vsyncpa [#allocation5 + $0x1], 1 }
 0x199   :  { %530 = vsyncpa [#allocation6], 1 }
 0x19a   :  { %532 = vsyncpa [#allocation6 + $0x1], 1 }

</bundles_post_ra>
